<compile_context>
chip_gen: v7x
topology: tpu7x:2x2x1
jax: 0.10.0
libtpu: 0.0.40
codegen_flags: <defaults>
</compile_context>

<pallas_src>
import jax
import jax.numpy as jnp
from jax.experimental import pallas as pl
from jax.experimental.pallas import tpu as pltpu

MARGIN = 2.0
EPS = 1e-6  # default eps of F.pairwise_distance

LANE = 128
SUBLANE = 8
_VMEM_TILE_BUDGET = 24 * 1024 * 1024  # bytes for 2 inputs x 2 pipeline buffers


def _round_up(x, m):
    return (x + m - 1) // m * m


def contrastive_loss_kernel(o1_ref, o2_ref, label_ref, partial_ref):
    # Streamed (TB, Dp) tile. Padded lanes/rows were constructed so diff == 0 there.
    diff = o1_ref[...] - o2_ref[...] + EPS                      # VPU elementwise
    sq_dist = jnp.sum(diff * diff, axis=-1, keepdims=True)      # XLU lane reduce -> (TB, 1)
    d = jnp.sqrt(sq_dist)                                       # EUP
    lab = label_ref[...]                                        # (TB, 1)
    hinge = jnp.maximum(MARGIN - d, 0.0)
    per_row = (1.0 - lab) * sq_dist + lab * (hinge * hinge)     # (TB, 1); padded rows == 0
    tile_sum = jnp.sum(per_row)                                 # scalar partial sum
    # Lane-dense (1, 8, 128) partial block; wrapper reads [:, 0, 0].
    partial_ref[...] = jnp.broadcast_to(tile_sum, partial_ref.shape).astype(partial_ref.dtype)


def contrastive_loss(output1, output2, label, *, max_rows_per_tile=512):
    """output1, output2: (B, D); label: (B, 1) or (B,). Returns scalar float32 loss."""
    output1 = jnp.asarray(output1, jnp.float32)
    output2 = jnp.asarray(output2, jnp.float32)
    label = jnp.asarray(label, jnp.float32)
    if label.ndim == 1:
        label = label[:, None]

    B, D = output1.shape
    assert output2.shape == (B, D)
    assert label.shape == (B, 1)

    # Lane-axis padding to a multiple of 128.
    d_pad = _round_up(max(D, LANE), LANE)

    # Row tile: multiple of 8, sized so double-buffered input tiles fit the VMEM budget.
    tb = _VMEM_TILE_BUDGET // (4 * d_pad * 4)          # 2 inputs * 2 buffers * 4 B/elem
    tb = max(SUBLANE, min(max_rows_per_tile, (tb // SUBLANE) * SUBLANE))
    tb = min(tb, _round_up(B, SUBLANE))
    b_pad = _round_up(B, tb)
    num_tiles = b_pad // tb

    # Padding chosen so every padded element has (o1 - o2 + EPS) == 0 and label == 0,
    # hence contributes exactly 0 to the running sum.
    o1 = jnp.pad(output1, ((0, b_pad - B), (0, d_pad - D)), constant_values=0.0)
    o2 = jnp.pad(output2, ((0, b_pad - B), (0, d_pad - D)), constant_values=EPS)
    lab = jnp.pad(label, ((0, b_pad - B), (0, 0)), constant_values=0.0)

    cost = pl.CostEstimate(
        flops=4 * b_pad * d_pad + 8 * b_pad,
        transcendentals=b_pad,
        bytes_accessed=8 * b_pad * d_pad + 4 * b_pad + 4 * num_tiles * SUBLANE * LANE,
    )

    partials = pl.pallas_call(
        contrastive_loss_kernel,
        out_shape=jax.ShapeDtypeStruct((num_tiles, SUBLANE, LANE), jnp.float32),
        grid=(num_tiles,),
        in_specs=[
            pl.BlockSpec((tb, d_pad), lambda i: (i, 0)),
            pl.BlockSpec((tb, d_pad), lambda i: (i, 0)),
            pl.BlockSpec((tb, 1), lambda i: (i, 0)),
        ],
        out_specs=pl.BlockSpec((1, SUBLANE, LANE), lambda i: (i, 0, 0)),
        compiler_params=pltpu.CompilerParams(
            dimension_semantics=("parallel",),       # lets v7x shard tiles across both TCs
            vmem_limit_bytes=48 * 1024 * 1024,       # headroom; still <= v7x physical VMEM
        ),
        cost_estimate=cost,
    )(o1, o2, lab)

    # Tiny final reduction + mean over the TRUE batch size (padded rows contributed 0).
    return jnp.sum(partials[:, 0, 0]) / B


def contrastive_loss_ref(output1, output2, label):
    # Pure-JAX reference mirroring the PyTorch forward.
    output1 = jnp.asarray(output1, jnp.float32)
    output2 = jnp.asarray(output2, jnp.float32)
    label = jnp.asarray(label, jnp.float32)
    if label.ndim == 1:
        label = label[:, None]
    d = jnp.sqrt(jnp.sum((output1 - output2 + EPS) ** 2, axis=-1, keepdims=True))
    return jnp.mean((1.0 - label) * d**2 + label * jnp.clip(MARGIN - d, 0.0) ** 2)


if __name__ == "__main__":
    key = jax.random.PRNGKey(0)

    # Case 1: small synthetic embedding pairs (module-consistent demo shapes).
    B, D = 8, 32
    k1, k2, k3, k4 = jax.random.split(key, 4)
    output1 = jax.random.normal(k1, (B, D), dtype=jnp.float32)
    output2 = jax.random.normal(k2, (B, D), dtype=jnp.float32)
    label = jax.random.bernoulli(k3, 0.5, (B, 1)).astype(jnp.float32)

    loss = jax.block_until_ready(contrastive_loss(output1, output2, label))
    ref = contrastive_loss_ref(output1, output2, label)
    assert jnp.allclose(loss, ref, rtol=1e-5, atol=1e-5), (loss, ref)

    # Case 2: non-aligned B/D with a forced small tile to exercise the multi-tile
    # grid, row/lane padding and the padded-row masking in the mean.
    B2, D2 = 50, 200
    k5, k6, k7 = jax.random.split(k4, 3)
    o1b = jax.random.normal(k5, (B2, D2), dtype=jnp.float32)
    o2b = jax.random.normal(k6, (B2, D2), dtype=jnp.float32)
    labb = jax.random.bernoulli(k7, 0.5, (B2, 1)).astype(jnp.float32)

    loss2 = jax.block_until_ready(contrastive_loss(o1b, o2b, labb, max_rows_per_tile=16))
    ref2 = contrastive_loss_ref(o1b, o2b, labb)
    assert jnp.allclose(loss2, ref2, rtol=1e-5, atol=1e-5), (loss2, ref2)

    print("KERNEL_OK")
</pallas_src>

<mosaic_0001>
module attributes {stable_mosaic.version = 11 : i64} {
  func.func @contrastive_loss_kernel(%arg0: i32, %arg1: memref<8x128xf32, #tpu.memory_space<vmem>>, %arg2: memref<8x128xf32, #tpu.memory_space<vmem>>, %arg3: memref<8x1xf32, #tpu.memory_space<vmem>>, %arg4: memref<1x8x128xf32, #tpu.memory_space<vmem>>) attributes {dimension_semantics = [#tpu.dimension_semantics<parallel>], iteration_bounds = array<i64: 1>, scalar_prefetch = 0 : i64, scratch_operands = 0 : i64, tpu.core_type = #tpu.core_type<tc>, window_params = [{transform_indices = @transform_0, window_bounds = array<i64: 8, 128>}, {transform_indices = @transform_1, window_bounds = array<i64: 8, 128>}, {transform_indices = @transform_2, window_bounds = array<i64: 8, 1>}, {transform_indices = @transform_3, window_bounds = array<i64: 1, 8, 128>}]} {
    %c0 = arith.constant 0 : index
    %c0_0 = arith.constant 0 : index
    %0 = vector.load %arg1[%c0, %c0_0] : memref<8x128xf32, #tpu.memory_space<vmem>>, vector<8x128xf32>
    %c0_1 = arith.constant 0 : index
    %c0_2 = arith.constant 0 : index
    %1 = vector.load %arg2[%c0_1, %c0_2] : memref<8x128xf32, #tpu.memory_space<vmem>>, vector<8x128xf32>
    %2 = arith.subf %0, %1 : vector<8x128xf32>
    %cst = arith.constant 9.99999997E-7 : f32
    %3 = vector.broadcast %cst : f32 to vector<8x128xf32>
    %4 = arith.addf %2, %3 : vector<8x128xf32>
    %5 = arith.mulf %4, %4 : vector<8x128xf32>
    %cst_3 = arith.constant dense<0.000000e+00> : vector<8xf32>
    %6 = vector.multi_reduction <add>, %5, %cst_3 [1] : vector<8x128xf32> to vector<8xf32>
    %7 = vector.shape_cast %6 : vector<8xf32> to vector<8x1xf32>
    %8 = math.sqrt %7 : vector<8x1xf32>
    %c0_4 = arith.constant 0 : index
    %c0_5 = arith.constant 0 : index
    %9 = vector.load %arg3[%c0_4, %c0_5] : memref<8x1xf32, #tpu.memory_space<vmem>>, vector<8x1xf32>
    %cst_6 = arith.constant 2.000000e+00 : f32
    %10 = vector.broadcast %cst_6 : f32 to vector<8x1xf32>
    %11 = arith.subf %10, %8 : vector<8x1xf32>
    %cst_7 = arith.constant 0.000000e+00 : f32
    %12 = vector.broadcast %cst_7 : f32 to vector<8x1xf32>
    %13 = arith.maximumf %11, %12 : vector<8x1xf32>
    %cst_8 = arith.constant 1.000000e+00 : f32
    %14 = vector.broadcast %cst_8 : f32 to vector<8x1xf32>
    %15 = arith.subf %14, %9 : vector<8x1xf32>
    %16 = arith.mulf %15, %7 : vector<8x1xf32>
    %17 = arith.mulf %13, %13 : vector<8x1xf32>
    %18 = arith.mulf %9, %17 : vector<8x1xf32>
    %19 = arith.addf %16, %18 : vector<8x1xf32>
    %20 = vector.shape_cast %19 : vector<8x1xf32> to vector<1x8x1xf32>
    %cst_9 = arith.constant dense<0.000000e+00> : vector<1xf32>
    %21 = vector.multi_reduction <add>, %20, %cst_9 [1, 2] : vector<1x8x1xf32> to vector<1xf32>
    %22 = vector.shape_cast %21 : vector<1xf32> to vector<1x1x1xf32>
    %23 = vector.extract %22[0, 0, 0] : f32 from vector<1x1x1xf32>
    %24 = vector.broadcast %23 : f32 to vector<1x8x128xf32>
    %c0_10 = arith.constant 0 : index
    %c0_11 = arith.constant 0 : index
    %c0_12 = arith.constant 0 : index
    %25 = vector.load %arg4[%c0_10, %c0_11, %c0_12] : memref<1x8x128xf32, #tpu.memory_space<vmem>>, vector<1x8x128xf32>
    tpu.vector_store %arg4[%c0_10, %c0_11, %c0_12], %24 {strides = array<i32>} : memref<1x8x128xf32, #tpu.memory_space<vmem>>, vector<1x8x128xf32>,
    return
  }
  func.func @transform_0(%arg0: i32) -> (i32, i32) {
    %c0_i32 = arith.constant 0 : i32
    %c0_i32_0 = arith.constant 0 : i32
    return %arg0, %c0_i32 : i32, i32
  }
  func.func @transform_1(%arg0: i32) -> (i32, i32) {
    %c0_i32 = arith.constant 0 : i32
    %c0_i32_0 = arith.constant 0 : i32
    return %arg0, %c0_i32 : i32, i32
  }
  func.func @transform_2(%arg0: i32) -> (i32, i32) {
    %c0_i32 = arith.constant 0 : i32
    %c0_i32_0 = arith.constant 0 : i32
    return %arg0, %c0_i32 : i32, i32
  }
  func.func @transform_3(%arg0: i32) -> (i32, i32, i32) {
    %c0_i32 = arith.constant 0 : i32
    %c0_i32_0 = arith.constant 0 : i32
    %c0_i32_1 = arith.constant 0 : i32
    return %arg0, %c0_i32, %c0_i32_0 : i32, i32, i32
  }
}

</mosaic_0001>

<bundles_post_ra>
// kernel: tpu_custom_call.1
= control target key start
LH: loop header
LB: loop body
LE: loop exit
PB: predicated region body
PF: predicated region fallthrough
CT: control target
= control target key end

     0   :  { %8 = vsyncpa [#allocation3], 0  ;;  %s183_s0 = inlined_call_operand.vmem [shape: f32[8,128], index: 0, kind: input, shape index: {}]   ;;  %s184_s1 = inlined_call_operand.hbm [shape: f32[8,128], index: 1, kind: input, shape index: {}]   ;;  %s185_s2 = inlined_call_operand.vmem [shape: f32[8,1], index: 2, kind: input, shape index: {}]   ;;  %s186_s3 = inlined_call_operand.hbm [shape: f32[1,8,128], index: 3, kind: output, shape index: {}]  }
   0x1   :  { %9 = vsyncpa [#allocation4], 0  ;;  %s131_s12 = smov [#allocation2]   ;;  %s83_s16 = scalar_lea.hbm %s184_s1, 128 }
   0x2   :  { %s18_s13 = sshll.u32 %s131_s12, 4  ;;  %p84_p0 = scmp.ne.s32.totalorder %s184_s1, %s83_s16  ;;  %s19_s13 = int_to_ptr.vmem [resolvable:$true] %s18_s13 }
   0x3   :  { %p87_p1 = scmp.lt.u32.totalorder %s83_s16, %s184_s1 }
   0x5   :  { %p89_p2 = pnand %p87_p1, %p84_p0 }
   0x7   :  { %92 = shalt.err (!%p89_p2)
}
   0x8   :  { %s93_s21 = scalar_lea.vmem %s19_s13, 128  ;;  %p98_p4 = scmp.lt.s32.totalorder %s19_s13, %s19_s13 }
   0x9   :  { %p94_p3 = scmp.ne.s32.totalorder %s19_s13, %s93_s21  ;;  %p99_p5 = scmp.lt.s32.totalorder %s93_s21, %s93_s21 }
   0xb   :  { %p100_p6 = por %p99_p5, %p98_p4 }
   0xd   :  { %p101_p7 = pnand %p100_p6, %p94_p3 }
   0xf   :  { %104 = shalt.err (!%p101_p7)
}
  0x10   :  { %21 = dma.hbm_to_vmem [thread:$0]  %s184_s1, 128, %s19_s13, [#allocation3]  }
  0x11   :  { %127 = dma.done.wait [#allocation3], 128  }
  0x12   :  { %128 = vsyncadd [#allocation3], 4294967168  ;;  %v27_v0 = vld [vmem:[%s183_s0] sm:$0xff]  ;;  %vm49_vm2 = vcmask 7168   ;;  %s132_s0 = smov [#allocation5]  }
  0x13   :  { %v28_v1 = vld [vmem:[#allocation2] sm:$0xff] }
  0x14   :  { %v29_v2 = vsub.f32 %v27_v0, %v28_v1  ;;  %v41_v11 = vld [vmem:[%s185_s2] sm:$0xff]  ;;  %s68_s2 = sshll.u32 %s132_s0, 4  ;;  %s69_s2 = int_to_ptr.vmem [resolvable:$true] %s68_s2 }
  0x15   :  { %v44_v14 = vsub.f32 1.0, %v41_v11  ;;  %s105_s28 = scalar_lea.vmem %s69_s2, 128  ;;  %p110_p9 = scmp.lt.s32.totalorder %s69_s2, %s69_s2 }
  0x16   :  { %v30_v3 = vadd.f32 1e-06, %v29_v2  ;;  %p106_p8 = scmp.ne.s32.totalorder %s69_s2, %s105_s28  ;;  %p111_p10 = scmp.lt.s32.totalorder %s105_s28, %s105_s28 }
  0x18   :  { %v31_v4 = vmul.f32 %v30_v3, %v30_v3  ;;  %p112_p11 = por %p111_p10, %p110_p9 }
  0x1a   :  { %32 = vadd.xlane.f32.xlu0 %v31_v4  ;;  %p113_p12 = pnand %p112_p11, %p106_p8 }
  0xa7   :  { %v33_v5 = vpop.xlane.xlu0 %32 }
  0xa8   :  { %81 = vrsqrt.f32 %v33_v5  ;;  %vm36_vm0 = vcmp.eq.f32.partialorder %v33_v5, inf  ;;  %v39_v8 = vand.u32 2147483648, %v33_v5  ;;  %vm38_vm1 = vcmp.eq.f32.partialorder %v33_v5, 0.0 }
  0xa9   :  { %v45_v16 = vmul.f32 %v44_v14, %v33_v5 }
  0xb2   :  { %v82_v6 = vpop.eup %81 }
  0xb3   :  { %v35_v7 = vmul.f32 %v82_v6, %v33_v5 }
  0xb5   :  { %v37_v9 = vsel %vm36_vm0, %v33_v5, %v35_v7 }
  0xb6   :  { %v40_v10 = vsel %vm38_vm1, %v39_v8, %v37_v9 }
  0xb7   :  { %v42_v12 = vsub.f32 2.0, %v40_v10 }
  0xb9   :  { %v43_v13 = vmax.f32 %v42_v12, 0.0 }
  0xbb   :  { %v46_v15 = vmul.f32 %v43_v13, %v43_v13 }
  0xbd   :  { %v47_v17 = vmul.f32 %v46_v15, %v41_v11 }
  0xbf   :  { %v48_v18 = vadd.f32 %v47_v17, %v45_v16 }
  0xc1   :  { %v50_v19 = vsel %vm49_vm2, %v48_v18, 0.0 }
  0xc2   :  { %51 = vadd.xlane.f32.xlu0 %v50_v19 }
 0x14f   :  { %v52_v20 = vpop.xlane.xlu0 %51 }
 0x150   :  { %v53_v21 = vrot.slane %v52_v20, 4 }
 0x152   :  { %v54_v22 = vadd.f32 %v53_v21, %v52_v20 }
 0x154   :  { %v55_v23 = vrot.slane %v54_v22, 2 }
 0x156   :  { %v56_v24 = vadd.f32 %v55_v23, %v54_v22 }
 0x158   :  { %v57_v25 = vrot.slane %v56_v24, 1 }
 0x15a   :  { %v58_v26 = vadd.f32 %v57_v25, %v56_v24 }
 0x15c   :  { %77 = vpush %v58_v26 }
 0x18d   :  { %s78_s27 = spop %77 }
 0x18e   :  { %v60_v27 = vstv %s78_s27 }
 0x18f   :  { %61 = vst [vmem:[#allocation5] sm:$0xff] %v60_v27 }
 0x190   :  { %116 = shalt.err (!%p113_p12)
}
 0x191   :  { %s117_s4 = scalar_lea.hbm %s186_s3, 128 }
 0x192   :  { %p118_p13 = scmp.ne.s32.totalorder %s186_s3, %s117_s4  ;;  %p121_p0 = scmp.lt.u32.totalorder %s117_s4, %s186_s3 }
 0x194   :  { %p123_p1 = pnand %p121_p0, %p118_p13 }
 0x196   :  { %126 = shalt.err (!%p123_p1)
}
 0x197   :  { %71 = dma.vmem_to_hbm [thread:$0]  %s69_s2, 128, %s186_s3, [#allocation4]  }
 0x198   :  { %129 = dma.done.wait [#allocation4], 128  }
 0x199   :  { %130 = vsyncadd [#allocation4], 4294967168 }
 0x19a   :  { %75 = vsyncpa [#allocation3], 1 }
 0x19b   :  { %76 = vsyncpa [#allocation4], 1 }

</bundles_post_ra>
